<compile_context>
chip_gen: v6e
topology: v6e:2x2x1
jax: 0.10.0
libtpu: 0.0.40
codegen_flags: <defaults>
</compile_context>

<pallas_src>
import functools

import jax
import jax.numpy as jnp
from jax.experimental import pallas as pl
from jax.experimental.pallas import tpu as pltpu


_VMEM_LIMIT = 32 * 1024 * 1024          # safe scoped limit on v5e/v6e/v7x
_BLOCK_BUDGET = 2 * 1024 * 1024         # per-array per-block byte budget


# ---------------------------------------------------------------------------
# tiling helpers
# ---------------------------------------------------------------------------
def _flat_lane_layout(total, max_lanes=2048):
    """(rows, L) with L a multiple of 128 that divides `total`, else None."""
    top = min(max_lanes, total)
    for L in range(top - top % 128, 127, -128):
        if total % L == 0:
            return total // L, L
    return None


def _row_block(rows, max_rows=512):
    if rows <= max_rows:
        return rows
    for rb in (512, 256, 128, 64, 32, 16, 8):
        if rows % rb == 0:
            return rb
    return rows


def _channel_chunk(C, bytes_per_channel, budget=_BLOCK_BUDGET):
    """Largest divisor of C whose chunk fits the budget (>= 1)."""
    best = 1
    for cc in range(1, C + 1):
        if C % cc == 0 and cc * bytes_per_channel <= budget:
            best = cc
    return best


def _channel_block_lane_safe(C, bytes_per_channel, budget=_BLOCK_BUDGET):
    """Channel block for a (., cb, HW) BlockSpec: cb == C or cb % 8 == 0."""
    if C * bytes_per_channel <= budget:
        return C
    best = None
    cb = 8
    while cb < C:
        if C % cb == 0 and cb * bytes_per_channel <= budget:
            best = cb
        cb += 8
    return best if best is not None else C


# ---------------------------------------------------------------------------
# mode='add'
# ---------------------------------------------------------------------------
def _add_kernel(y1_ref, y2_ref, out_ref):
    out_ref[...] = (y1_ref[...] + y2_ref[...]) * 0.5


def _strategy_add(y1, y2):
    shape = y1.shape
    total = 1
    for d in shape:
        total *= d

    layout = _flat_lane_layout(total)
    if layout is None:
        # TODO(synk): lane-sparse fallback (total not a multiple of 128)
        N = shape[0]
        rest = shape[1:]
        spec = pl.BlockSpec((1,) + rest, lambda n: (n,) + (0,) * len(rest))
        return pl.pallas_call(
            _add_kernel,
            out_shape=jax.ShapeDtypeStruct(shape, y1.dtype),
            grid=(N,),
            in_specs=[spec, spec],
            out_specs=spec,
            compiler_params=pltpu.CompilerParams(
                dimension_semantics=("parallel",),
                vmem_limit_bytes=_VMEM_LIMIT),
        )(y1, y2)

    rows, L = layout
    rb = _row_block(rows)
    y1f = y1.reshape(rows, L)
    y2f = y2.reshape(rows, L)
    spec = pl.BlockSpec((rb, L), lambda i: (i, 0))
    out = pl.pallas_call(
        _add_kernel,
        out_shape=jax.ShapeDtypeStruct((rows, L), y1.dtype),
        grid=(pl.cdiv(rows, rb),),
        in_specs=[spec, spec],
        out_specs=spec,
        compiler_params=pltpu.CompilerParams(
            dimension_semantics=("parallel",),
            vmem_limit_bytes=_VMEM_LIMIT),
    )(y1f, y2f)
    return out.reshape(shape)


# ---------------------------------------------------------------------------
# mode='l1'
# ---------------------------------------------------------------------------
def _box_filter(s, window_width):
    """Separable (2w+1)x(2w+1) mean filter with zero padding on an (H, W) map.

    2k rotates instead of k^2; one compare+select per tap via 1-D boundary
    masks (column mask for the lane pass, row mask for the sublane pass).
    """
    H, W = s.shape
    k = 2 * window_width + 1
    col = jax.lax.broadcasted_iota(jnp.int32, (H, W), 1)
    row = jax.lax.broadcasted_iota(jnp.int32, (H, W), 0)
    zero = jnp.zeros_like(s)

    h = s
    for d in range(1, window_width + 1):            # horizontal (lane) pass
        h = h + jnp.where(col < W - d, jnp.roll(s, -d, axis=1), zero)
        h = h + jnp.where(col >= d, jnp.roll(s, d, axis=1), zero)

    v = h
    for d in range(1, window_width + 1):            # vertical (sublane) pass
        v = v + jnp.where(row < H - d, jnp.roll(h, -d, axis=0), zero)
        v = v + jnp.where(row >= d, jnp.roll(h, d, axis=0), zero)

    return v * (1.0 / float(k * k))


def _weight_kernel(y1_ref, y2_ref, w1_ref, s1_ref, s2_ref, *, window_width):
    # grid = (N, C // cc); blocks: y* (1, cc, H, W), w1 (1, H, W)
    c = pl.program_id(1)

    @pl.when(c == 0)
    def _():
        s1_ref[...] = jnp.zeros_like(s1_ref)
        s2_ref[...] = jnp.zeros_like(s2_ref)

    # the constant all-channel conv weight collapses the conv's input-channel
    # dimension to a plain channel sum of |y|
    s1_ref[...] += jnp.sum(jnp.abs(y1_ref[0]), axis=0)
    s2_ref[...] += jnp.sum(jnp.abs(y2_ref[0]), axis=0)

    @pl.when(c == pl.num_programs(1) - 1)
    def _():
        a1 = _box_filter(s1_ref[...], window_width)
        a2 = _box_filter(s2_ref[...], window_width)
        inv = pl.reciprocal(a1 + a2, approx=False)   # exact: keeps 1e-5 tol
        w1_ref[0] = a1 * inv


def _fuse_kernel(w1_ref, y1_ref, y2_ref, out_ref):
    # lane-dense blocks: w1 (1, 1, HW), y* / out (1, cb, HW)
    w1 = w1_ref[0]                       # (1, HW) — broadcast over channels
    y1 = y1_ref[0]                       # (cb, HW)
    y2 = y2_ref[0]
    # w1*y1 + (1-w1)*y2 == y2 + w1*(y1-y2): one broadcast multiply, no 2nd div
    out_ref[0] = (y2 + w1 * (y1 - y2)).astype(out_ref.dtype)


def _strategy_l1(y1, y2, window_width):
    N, C, H, W = y1.shape
    HW = H * W

    # ---- pass 1: per-batch weight map w1 = A1/(A1+A2), shape (N, H, W) ----
    cc = _channel_chunk(C, H * W * 4)
    w1 = pl.pallas_call(
        functools.partial(_weight_kernel, window_width=window_width),
        out_shape=jax.ShapeDtypeStruct((N, H, W), jnp.float32),
        grid_spec=pltpu.PrefetchScalarGridSpec(
            num_scalar_prefetch=0,
            grid=(N, C // cc),
            in_specs=[pl.BlockSpec((1, cc, H, W), lambda n, c: (n, c, 0, 0)),
                      pl.BlockSpec((1, cc, H, W), lambda n, c: (n, c, 0, 0))],
            out_specs=pl.BlockSpec((1, H, W), lambda n, c: (n, 0, 0)),
            scratch_shapes=[pltpu.VMEM((H, W), jnp.float32),
                            pltpu.VMEM((H, W), jnp.float32)]),
        compiler_params=pltpu.CompilerParams(
            dimension_semantics=("parallel", "arbitrary"),
            vmem_limit_bytes=_VMEM_LIMIT),
    )(y1, y2)

    # ---- pass 2: lane-dense elementwise fusion over (N, C, H*W) ----------
    cb = _channel_block_lane_safe(C, HW * 4)
    y1f = y1.reshape(N, C, HW)
    y2f = y2.reshape(N, C, HW)
    w1f = w1.reshape(N, 1, HW)
    y_spec = pl.BlockSpec((1, cb, HW), lambda n, c: (n, c, 0))
    w_spec = pl.BlockSpec((1, 1, HW), lambda n, c: (n, 0, 0))
    out = pl.pallas_call(
        _fuse_kernel,
        out_shape=jax.ShapeDtypeStruct((N, C, HW), y1.dtype),
        grid=(N, C // cb),
        in_specs=[w_spec, y_spec, y_spec],
        out_specs=y_spec,
        compiler_params=pltpu.CompilerParams(
            dimension_semantics=("parallel", "parallel"),
            vmem_limit_bytes=_VMEM_LIMIT),
    )(w1f, y1f, y2f)
    return out.reshape(N, C, H, W)


# ---------------------------------------------------------------------------
# public wrapper
# ---------------------------------------------------------------------------
def strategy_forward(y1, y2, mode='add', window_width=1):
    assert y1.shape == y2.shape and y1.dtype == y2.dtype
    if mode == 'add':
        return _strategy_add(y1, y2)
    if mode == 'l1':
        return _strategy_l1(y1, y2, window_width)
    raise ValueError(f"unknown mode {mode!r}")


# ---------------------------------------------------------------------------
# pure-JAX reference (mirrors the PyTorch forward exactly) for validation
# ---------------------------------------------------------------------------
def _reference(y1, y2, mode='add', window_width=1):
    if mode == 'add':
        return (y1 + y2) / 2
    k = 2 * window_width + 1
    C = y1.shape[1]
    kernel = jnp.full((C, C, k, k), 1.0 / (k * k), dtype=jnp.float32)
    conv = functools.partial(
        jax.lax.conv_general_dilated,
        rhs=kernel,
        window_strides=(1, 1),
        padding=[(window_width, window_width)] * 2,
        dimension_numbers=('NCHW', 'OIHW', 'NCHW'))
    a1 = conv(jnp.abs(y1))
    a2 = conv(jnp.abs(y2))
    w1 = a1 / (a1 + a2)
    w2 = a2 / (a1 + a2)
    return w1 * y1 + w2 * y2


# ---------------------------------------------------------------------------
if __name__ == "__main__":
    key = jax.random.PRNGKey(0)
    k1, k2 = jax.random.split(key)
    N, C, H, W = 2, 4, 16, 16
    y1 = jax.random.normal(k1, (N, C, H, W), dtype=jnp.float32)
    y2 = jax.random.normal(k2, (N, C, H, W), dtype=jnp.float32)

    # mode='add'
    out_add = jax.block_until_ready(strategy_forward(y1, y2, mode='add'))
    ref_add = _reference(y1, y2, mode='add')
    assert jnp.allclose(out_add, ref_add, atol=1e-6, rtol=1e-6)

    # mode='l1', window_width=1
    out_l1 = jax.block_until_ready(
        strategy_forward(y1, y2, mode='l1', window_width=1))
    ref_l1 = _reference(y1, y2, mode='l1', window_width=1)
    assert jnp.allclose(out_l1, ref_l1, atol=1e-5, rtol=1e-5)

    # mode='l1', window_width=2 (exercises the separable filter with k=5)
    out_l1w2 = jax.block_until_ready(
        strategy_forward(y1, y2, mode='l1', window_width=2))
    ref_l1w2 = _reference(y1, y2, mode='l1', window_width=2)
    assert jnp.allclose(out_l1w2, ref_l1w2, atol=1e-5, rtol=1e-5)

    print("KERNEL_OK")
</pallas_src>

<mosaic_0001>
module attributes {stable_mosaic.version = 11 : i64} {
  func.func @_add_kernel(%arg0: i32, %arg1: memref<1x2048xf32, #tpu.memory_space<vmem>>, %arg2: memref<1x2048xf32, #tpu.memory_space<vmem>>, %arg3: memref<1x2048xf32, #tpu.memory_space<vmem>>) attributes {dimension_semantics = [#tpu.dimension_semantics<parallel>], iteration_bounds = array<i64: 1>, scalar_prefetch = 0 : i64, scratch_operands = 0 : i64, tpu.core_type = #tpu.core_type<tc>, window_params = [{transform_indices = @transform_0, window_bounds = array<i64: 1, 2048>}, {transform_indices = @transform_1, window_bounds = array<i64: 1, 2048>}, {transform_indices = @transform_2, window_bounds = array<i64: 1, 2048>}]} {
    %c0 = arith.constant 0 : index
    %c0_0 = arith.constant 0 : index
    %0 = vector.load %arg1[%c0, %c0_0] : memref<1x2048xf32, #tpu.memory_space<vmem>>, vector<1x2048xf32>
    %c0_1 = arith.constant 0 : index
    %c0_2 = arith.constant 0 : index
    %1 = vector.load %arg2[%c0_1, %c0_2] : memref<1x2048xf32, #tpu.memory_space<vmem>>, vector<1x2048xf32>
    %2 = arith.addf %0, %1 : vector<1x2048xf32>
    %cst = arith.constant 5.000000e-01 : f32
    %3 = vector.broadcast %cst : f32 to vector<1x2048xf32>
    %4 = arith.mulf %2, %3 : vector<1x2048xf32>
    %c0_3 = arith.constant 0 : index
    %c0_4 = arith.constant 0 : index
    %5 = vector.load %arg3[%c0_3, %c0_4] : memref<1x2048xf32, #tpu.memory_space<vmem>>, vector<1x2048xf32>
    tpu.vector_store %arg3[%c0_3, %c0_4], %4 {strides = array<i32>} : memref<1x2048xf32, #tpu.memory_space<vmem>>, vector<1x2048xf32>,
    return
  }
  func.func @transform_0(%arg0: i32) -> (i32, i32) {
    %c0_i32 = arith.constant 0 : i32
    %c0_i32_0 = arith.constant 0 : i32
    return %arg0, %c0_i32 : i32, i32
  }
  func.func @transform_1(%arg0: i32) -> (i32, i32) {
    %c0_i32 = arith.constant 0 : i32
    %c0_i32_0 = arith.constant 0 : i32
    return %arg0, %c0_i32 : i32, i32
  }
  func.func @transform_2(%arg0: i32) -> (i32, i32) {
    %c0_i32 = arith.constant 0 : i32
    %c0_i32_0 = arith.constant 0 : i32
    return %arg0, %c0_i32 : i32, i32
  }
}

</mosaic_0001>

<bundles_post_ra>
// kernel: tpu_custom_call.1
= control target key start
LH: loop header
LB: loop body
LE: loop exit
PB: predicated region body
PF: predicated region fallthrough
CT: control target
= control target key end

     0   :  { %7 = vsyncpa [#allocation3], 0  ;;  %s158_s0 = inlined_call_operand.hbm [shape: f32[1,2048], index: 0, kind: input, shape index: {}]   ;;  %s159_s1 = inlined_call_operand.hbm [shape: f32[1,2048], index: 1, kind: input, shape index: {}]   ;;  %s160_s2 = inlined_call_operand.hbm [shape: f32[1,2048], index: 2, kind: output, shape index: {}]  }
   0x1   :  { %8 = vsyncpa [#allocation6], 0 }
   0x2   :  { %9 = vsyncpa [#allocation4], 0  ;;  %s131_s9 = smov [#allocation2]   ;;  %s132_s11 = smov [#allocation5]  }
   0x3   :  { %s16_s10 = sshll.u32 %s131_s9, 4  ;;  %s26_s12 = sshll.u32 %s132_s11, 4  ;;  %s17_s10 = int_to_ptr.vmem [resolvable:$true] %s16_s10  ;;  %s27_s12 = int_to_ptr.vmem [resolvable:$true] %s26_s12 }
   0x4   :  { %s73_s13 = scalar_lea.vmem %s17_s10, 256  ;;  %p78_p1 = scmp.lt.s32.totalorder %s17_s10, %s17_s10 }
   0x5   :  { %p74_p0 = scmp.ne.s32.totalorder %s17_s10, %s73_s13  ;;  %p79_p2 = scmp.lt.s32.totalorder %s73_s13, %s73_s13 }
   0x7   :  { %p80_p3 = por %p79_p2, %p78_p1 }
   0x9   :  { %p81_p4 = pnand %p80_p3, %p74_p0 }
   0xb   :  { %84 = shalt.err (!%p81_p4)
}
   0xc   :  { %19 = dma.hbm_to_vmem [thread:$0]  %s158_s0, 256, %s17_s10, [#allocation3]  }
   0xd   :  { %s93_s16 = scalar_lea.vmem %s27_s12, 256  ;;  %p98_p6 = scmp.lt.s32.totalorder %s27_s12, %s27_s12 }
   0xe   :  { %p94_p5 = scmp.ne.s32.totalorder %s27_s12, %s93_s16  ;;  %p99_p7 = scmp.lt.s32.totalorder %s93_s16, %s93_s16 }
  0x10   :  { %p100_p8 = por %p99_p7, %p98_p6 }
  0x12   :  { %p101_p9 = pnand %p100_p8, %p94_p5 }
  0x14   :  { %104 = shalt.err (!%p101_p9)
}
  0x15   :  { %29 = dma.hbm_to_vmem [thread:$0]  %s159_s1, 256, %s27_s12, [#allocation6]  }
  0x16   :  { %125 = dma.done.wait [#allocation3], 256  }
  0x17   :  { %126 = vsyncadd [#allocation3], 4294967040 }
  0x18   :  { %127 = dma.done.wait [#allocation6], 256  }
  0x19   :  { %128 = vsyncadd [#allocation6], 4294967040  ;;  %v36_v0 = vld [vmem:[#allocation2] sm:$0xff]  ;;  %v38_v1 = vld [vmem:[#allocation5] sm:$0xff]  ;;  %s133_s0 = smov [#allocation7]  }
  0x1a   :  { %v37_v2 = vld [vmem:[#allocation2 + $0x8] sm:$0xff]  ;;  %v40_v3 = vadd.f32 %v38_v1, %v36_v0  ;;  %v39_v4 = vld [vmem:[#allocation5 + $0x8] sm:$0xff]  ;;  %s52_s19 = sshll.u32 %s133_s0, 4  ;;  %s53_s19 = int_to_ptr.vmem [resolvable:$true] %s52_s19 }
  0x1b   :  { %v41_v5 = vadd.f32 %v39_v4, %v37_v2  ;;  %s105_s20 = scalar_lea.vmem %s53_s19, 256  ;;  %p110_p11 = scmp.lt.s32.totalorder %s53_s19, %s53_s19 }
  0x1c   :  { %v42_v6 = vmul.f32 0.5, %v40_v3  ;;  %p106_p10 = scmp.ne.s32.totalorder %s53_s19, %s105_s20  ;;  %p111_p12 = scmp.lt.s32.totalorder %s105_s20, %s105_s20 }
  0x1d   :  { %v43_v7 = vmul.f32 0.5, %v41_v5 }
  0x1e   :  { %44 = vst [vmem:[#allocation7] sm:$0xff] %v42_v6  ;;  %p112_p13 = por %p111_p12, %p110_p11 }
  0x1f   :  { %45 = vst [vmem:[#allocation7 + $0x8] sm:$0xff] %v43_v7 }
  0x20   :  { %p113_p0 = pnand %p112_p13, %p106_p10 }
  0x22   :  { %116 = shalt.err (!%p113_p0)
}
  0x23   :  { %55 = dma.vmem_to_hbm [thread:$0]  %s53_s19, 256, %s160_s2, [#allocation4]  }
  0x24   :  { %129 = dma.done.wait [#allocation4], 256  }
  0x25   :  { %130 = vsyncadd [#allocation4], 4294967040 }
  0x26   :  { %59 = vsyncpa [#allocation3], 1 }
  0x27   :  { %60 = vsyncpa [#allocation6], 1 }
  0x28   :  { %61 = vsyncpa [#allocation4], 1 }

</bundles_post_ra>
